<compile_context>
chip_gen: v5e
topology: v5e:2x2
jax: 0.10.0
libtpu: 0.0.40
codegen_flags: <defaults>
</compile_context>

<pallas_src>
import jax
import jax.numpy as jnp
from jax import lax
from jax.experimental import pallas as pl
from jax.experimental.pallas import tpu as pltpu


def _dense_block_kernel(x5_ref, x0_ref, mask_ref, bcat_ref, b1_ref, w3_ref,
                        a2_ref, b2_ref, wca_ref, wcb_ref, c3_ref,
                        wc2a_ref, wc2b_ref, o_ref):
    f32 = jnp.float32
    x5 = x5_ref[...].astype(f32)            # (C0*25, tm)  5x5 patches of x
    x0 = x0_ref[...].astype(f32)            # (C0,    tm)  x itself
    # DenseLayer: conv2d_1 (3x3) -> conv2d_1_ (1x1) -> batch_normal_1,
    # evaluated at the 9 shifted positions needed by conv2d_2; the mask applies
    # conv2d_2's zero padding (t3 is 0 outside the image).
    s = jnp.dot(bcat_ref[...], x5, preferred_element_type=f32) + b1_ref[...]
    s = s * mask_ref[...].astype(f32)       # (9*G, tm)
    # conv2d_2 (3x3) as a single matmul over the 9 taps, then batch_normal_2.
    t5 = (a2_ref[...] * jnp.dot(w3_ref[...], s, preferred_element_type=f32)
          + b2_ref[...])                    # (G, tm)
    # cat([x, t5], ch) -> block 'norm' (BN folded into WcA/WcB/c3) -> 1x1 'conv'
    y3 = (jnp.dot(wca_ref[...], x0, preferred_element_type=f32)
          + jnp.dot(wcb_ref[...], t5, preferred_element_type=f32)
          + c3_ref[...])                    # (G, tm)
    # cat([x, y3], ch) -> module_2 1x1 conv -> tanh
    y4 = (jnp.dot(wc2a_ref[...], x0, preferred_element_type=f32)
          + jnp.dot(wc2b_ref[...], y3, preferred_element_type=f32))
    o_ref[...] = jnp.tanh(y4).astype(o_ref.dtype)


def dense_block_forward(x, w1, w2, bn1, w3, bn2, bn3, wc, wc2,
                        *, eps=1e-5, tm=256, operand_dtype=jnp.float32):
    """DenseBlock forward (num_layer=1, eval-mode BN, drop_rate=0).

    x   : (N, C0, H, W)  NCHW input
    w1  : (C0, C0, 3, 3)  DenseLayer conv2d_1   (bias=False)
    w2  : (G,  C0, 1, 1)  DenseLayer conv2d_1_  (bias=False)
    bn1 : (gamma, beta, mean, var), each (G,)     batch_normal_1
    w3  : (G,  G,  3, 3)  DenseLayer conv2d_2   (bias=False)
    bn2 : (gamma, beta, mean, var), each (G,)     batch_normal_2
    bn3 : (gamma, beta, mean, var), each (C0+G,)  DenseBlock 'norm'
    wc  : (G, C0+G, 1, 1) DenseBlock 'conv'        (bias=False)
    wc2 : (G, C0+G, 1, 1) DenseBlock module_2 conv (bias=False)
    """
    f32 = jnp.float32
    N, C0, H, W = x.shape
    G = w2.shape[0]
    M = N * H * W
    K5 = C0 * 25

    # ---- fold eval-mode BN into per-channel affine (a*t + b) ----------------
    def bn_affine(p):
        g, b, m, v = (jnp.asarray(t, f32) for t in p)
        a = g * lax.rsqrt(v + eps)
        return a, b - a * m

    a1, b1 = bn_affine(bn1)
    a2, b2 = bn_affine(bn2)
    a3, b3 = bn_affine(bn3)

    w1 = jnp.asarray(w1, f32)
    W2m = jnp.asarray(w2, f32)[:, :, 0, 0]             # (G, C0)
    w3 = jnp.asarray(w3, f32)
    Wcm = jnp.asarray(wc, f32)[:, :, 0, 0]             # (G, C0+G)
    Wc2m = jnp.asarray(wc2, f32)[:, :, 0, 0]           # (G, C0+G)

    # ---- per-tap folded weights for conv3x3 -> conv1x1 -> BN1 ----------------
    # S[t*G+g, m] = BN1(conv1x1(conv3x3(x)))[g] at pixel m shifted by tap t.
    taps = [(dy, dx) for dy in (-1, 0, 1) for dx in (-1, 0, 1)]
    scaled_w2 = a1[:, None] * W2m                       # (G, C0)
    b_rows, w3_cols = [], []
    for dy, dx in taps:
        A = jnp.zeros((C0, C0, 5, 5), f32)
        A = A.at[:, :, dy + 1:dy + 4, dx + 1:dx + 4].set(w1)
        b_rows.append(scaled_w2 @ A.reshape(C0, K5))    # (G, K5)
        w3_cols.append(w3[:, :, dy + 1, dx + 1])        # (G, G)
    Bcat = jnp.concatenate(b_rows, axis=0)              # (9G, K5)
    b1col = jnp.tile(b1, 9)[:, None]                    # (9G, 1)
    W3cat = jnp.concatenate(w3_cols, axis=1)            # (G, 9G)

    # ---- fold BN3 + the channel concats into the two 1x1 convs --------------
    WcA = Wcm[:, :C0] * a3[None, :C0]                   # acts on x
    WcB = Wcm[:, C0:] * a3[None, C0:]                   # acts on t5
    c3 = (Wcm @ b3)[:, None]                            # (G, 1)
    Wc2A = Wc2m[:, :C0]
    Wc2B = Wc2m[:, C0:]

    # ---- data in channels-on-sublane / pixels-on-lane layout ----------------
    xf = jnp.asarray(x, f32)
    xp = jnp.pad(xf, ((0, 0), (0, 0), (2, 2), (2, 2)))
    patches = jnp.stack([xp[:, :, i:i + H, j:j + W]
                         for i in range(5) for j in range(5)], axis=2)
    X5 = patches.transpose(1, 2, 0, 3, 4).reshape(K5, M)        # (C0*25, M)
    X0 = xf.transpose(1, 0, 2, 3).reshape(C0, M)                # (C0, M)

    yy = jnp.arange(H)[:, None]
    xx = jnp.arange(W)[None, :]
    mask9 = jnp.stack(
        [jnp.tile(((yy + dy >= 0) & (yy + dy < H) &
                   (xx + dx >= 0) & (xx + dx < W)).reshape(-1), N)
         for dy, dx in taps], axis=0).astype(f32)               # (9, M)
    Mask = jnp.repeat(mask9, G, axis=0)                         # (9G, M)

    # ---- lane tiling: pad M up to a multiple of tm (tm multiple of 128) ------
    LANE = 128
    tm = max(LANE, (int(tm) // LANE) * LANE)
    Mp = pl.cdiv(M, tm) * tm
    if Mp != M:
        pad = ((0, 0), (0, Mp - M))
        X5, X0, Mask = (jnp.pad(t, pad) for t in (X5, X0, Mask))

    od = operand_dtype
    X5, X0, Mask = X5.astype(od), X0.astype(od), Mask.astype(od)

    data_spec = lambda rows: pl.BlockSpec((rows, tm), lambda i: (0, i))
    full_spec = lambda shp: pl.BlockSpec(shp, lambda i: (0, 0))

    out_flat = pl.pallas_call(
        _dense_block_kernel,
        out_shape=jax.ShapeDtypeStruct((G, Mp), f32),
        grid_spec=pltpu.PrefetchScalarGridSpec(
            num_scalar_prefetch=0,
            grid=(Mp // tm,),
            in_specs=[
                data_spec(K5),            # X5 patches
                data_spec(C0),            # X0
                data_spec(9 * G),         # Mask
                full_spec((9 * G, K5)),   # Bcat
                full_spec((9 * G, 1)),    # b1
                full_spec((G, 9 * G)),    # W3cat
                full_spec((G, 1)),        # a2
                full_spec((G, 1)),        # b2
                full_spec((G, C0)),       # WcA
                full_spec((G, G)),        # WcB
                full_spec((G, 1)),        # c3
                full_spec((G, C0)),       # Wc2A
                full_spec((G, G)),        # Wc2B
            ],
            out_specs=pl.BlockSpec((G, tm), lambda i: (0, i)),
        ),
        compiler_params=pltpu.CompilerParams(
            dimension_semantics=("parallel",)),
    )(X5, X0, Mask, Bcat, b1col, W3cat,
      a2[:, None], b2[:, None], WcA, WcB, c3, Wc2A, Wc2B)

    # back to PyTorch NCHW
    return out_flat[:, :M].reshape(G, N, H, W).transpose(1, 0, 2, 3)


def _reference(x, w1, w2, bn1, w3, bn2, bn3, wc, wc2, *, eps=1e-5):
    # straight-line JAX mirror of the PyTorch module (num_layer=1, eval BN)
    def bn(t, p):
        g, b, m, v = p
        scale = (g / jnp.sqrt(v + eps))[None, :, None, None]
        return (t - m[None, :, None, None]) * scale + b[None, :, None, None]

    def conv(t, w, pad):
        return lax.conv_general_dilated(
            t, w, window_strides=(1, 1), padding=[(pad, pad), (pad, pad)],
            dimension_numbers=("NCHW", "OIHW", "NCHW"))

    t = conv(x, w1, 1)                       # conv2d_1
    t = conv(t, w2, 0)                       # conv2d_1_
    t = bn(t, bn1)                           # batch_normal_1
    t = conv(t, w3, 1)                       # conv2d_2
    t = bn(t, bn2)                           # batch_normal_2
    y = jnp.concatenate([x, t], axis=1)      # DenseLayer cat
    y = bn(y, bn3)                           # DenseBlock 'norm' (in_c+out_c)
    y = conv(y, wc, 0)                       # DenseBlock 'conv'
    y = jnp.concatenate([x, y], axis=1)      # DenseBlock forward cat
    y = conv(y, wc2, 0)                      # module_2 'conv'
    return jnp.tanh(y)


if __name__ == "__main__":
    key = jax.random.PRNGKey(0)
    in_c, out_c = 4, 4                       # num_layer=1, drop_rate=0
    N, H, W = 2, 16, 16
    ks = jax.random.split(key, 9)

    def u(k, shape, scale=0.3):
        return jax.random.uniform(k, shape, jnp.float32, -scale, scale)

    x = jax.random.normal(ks[0], (N, in_c, H, W), jnp.float32)
    w1 = u(ks[1], (in_c, in_c, 3, 3))
    w2 = u(ks[2], (out_c, in_c, 1, 1))
    w3 = u(ks[3], (out_c, out_c, 3, 3))
    wc = u(ks[4], (out_c, in_c + out_c, 1, 1))
    wc2 = u(ks[5], (out_c, in_c + out_c, 1, 1))

    def bn_params(k, c):
        k1, k2, k3, k4 = jax.random.split(k, 4)
        gamma = jax.random.uniform(k1, (c,), jnp.float32, 0.5, 1.5)
        beta = u(k2, (c,), 0.2)
        mean = u(k3, (c,), 0.2)
        var = jax.random.uniform(k4, (c,), jnp.float32, 0.5, 1.5)
        return gamma, beta, mean, var

    bn1 = bn_params(ks[6], out_c)
    bn2 = bn_params(ks[7], out_c)
    bn3 = bn_params(ks[8], in_c + out_c)

    out = jax.block_until_ready(
        dense_block_forward(x, w1, w2, bn1, w3, bn2, bn3, wc, wc2))

    ref = _reference(x, w1, w2, bn1, w3, bn2, bn3, wc, wc2)
    assert out.shape == (N, out_c, H, W), out.shape
    err = float(jnp.max(jnp.abs(out - ref)))
    assert jnp.allclose(out, ref, atol=1e-3, rtol=1e-3), err
    print("KERNEL_OK")
</pallas_src>

<mosaic_0001>
module attributes {stable_mosaic.version = 11 : i64} {
  func.func @_dense_block_kernel(%arg0: i32, %arg1: memref<100x256xf32, #tpu.memory_space<vmem>>, %arg2: memref<4x256xf32, #tpu.memory_space<vmem>>, %arg3: memref<36x256xf32, #tpu.memory_space<vmem>>, %arg4: memref<36x100xf32, #tpu.memory_space<vmem>>, %arg5: memref<36x1xf32, #tpu.memory_space<vmem>>, %arg6: memref<4x36xf32, #tpu.memory_space<vmem>>, %arg7: memref<4x1xf32, #tpu.memory_space<vmem>>, %arg8: memref<4x1xf32, #tpu.memory_space<vmem>>, %arg9: memref<4x4xf32, #tpu.memory_space<vmem>>, %arg10: memref<4x4xf32, #tpu.memory_space<vmem>>, %arg11: memref<4x1xf32, #tpu.memory_space<vmem>>, %arg12: memref<4x4xf32, #tpu.memory_space<vmem>>, %arg13: memref<4x4xf32, #tpu.memory_space<vmem>>, %arg14: memref<4x256xf32, #tpu.memory_space<vmem>>) attributes {dimension_semantics = [#tpu.dimension_semantics<parallel>], iteration_bounds = array<i64: 2>, scalar_prefetch = 0 : i64, scratch_operands = 0 : i64, tpu.core_type = #tpu.core_type<tc>, window_params = [{transform_indices = @transform_0, window_bounds = array<i64: 100, 256>}, {transform_indices = @transform_1, window_bounds = array<i64: 4, 256>}, {transform_indices = @transform_2, window_bounds = array<i64: 36, 256>}, {pipeline_mode = #tpu.pipeline_mode<synchronous>, transform_indices = @transform_3, window_bounds = array<i64: 36, 100>}, {pipeline_mode = #tpu.pipeline_mode<synchronous>, transform_indices = @transform_4, window_bounds = array<i64: 36, 1>}, {pipeline_mode = #tpu.pipeline_mode<synchronous>, transform_indices = @transform_5, window_bounds = array<i64: 4, 36>}, {pipeline_mode = #tpu.pipeline_mode<synchronous>, transform_indices = @transform_6, window_bounds = array<i64: 4, 1>}, {pipeline_mode = #tpu.pipeline_mode<synchronous>, transform_indices = @transform_7, window_bounds = array<i64: 4, 1>}, {pipeline_mode = #tpu.pipeline_mode<synchronous>, transform_indices = @transform_8, window_bounds = array<i64: 4, 4>}, {pipeline_mode = #tpu.pipeline_mode<synchronous>, transform_indices = @transform_9, window_bounds = array<i64: 4, 4>}, {pipeline_mode = #tpu.pipeline_mode<synchronous>, transform_indices = @transform_10, window_bounds = array<i64: 4, 1>}, {pipeline_mode = #tpu.pipeline_mode<synchronous>, transform_indices = @transform_11, window_bounds = array<i64: 4, 4>}, {pipeline_mode = #tpu.pipeline_mode<synchronous>, transform_indices = @transform_12, window_bounds = array<i64: 4, 4>}, {transform_indices = @transform_13, window_bounds = array<i64: 4, 256>}]} {
    %c0 = arith.constant 0 : index
    %c0_0 = arith.constant 0 : index
    %0 = vector.load %arg1[%c0, %c0_0] : memref<100x256xf32, #tpu.memory_space<vmem>>, vector<100x256xf32>
    %c0_1 = arith.constant 0 : index
    %c0_2 = arith.constant 0 : index
    %1 = vector.load %arg2[%c0_1, %c0_2] : memref<4x256xf32, #tpu.memory_space<vmem>>, vector<4x256xf32>
    %c0_3 = arith.constant 0 : index
    %c0_4 = arith.constant 0 : index
    %2 = vector.load %arg4[%c0_3, %c0_4] : memref<36x100xf32, #tpu.memory_space<vmem>>, vector<36x100xf32>
    %cst = arith.constant dense<0.000000e+00> : vector<36x256xf32>
    %3 = tpu.matmul %2, %0, %cst {dimension_numbers = #tpu.dot_dimension_numbers<[1], [0], [0], [1], [0, 0, 1, 1], [], []>} : vector<36x100xf32>, vector<100x256xf32>, vector<36x256xf32> -> vector<36x256xf32>
    %c0_5 = arith.constant 0 : index
    %c0_6 = arith.constant 0 : index
    %4 = vector.load %arg5[%c0_5, %c0_6] : memref<36x1xf32, #tpu.memory_space<vmem>>, vector<36x1xf32>
    %5 = vector.broadcast %4 : vector<36x1xf32> to vector<36x256xf32>
    %6 = arith.addf %3, %5 : vector<36x256xf32>
    %c0_7 = arith.constant 0 : index
    %c0_8 = arith.constant 0 : index
    %7 = vector.load %arg3[%c0_7, %c0_8] : memref<36x256xf32, #tpu.memory_space<vmem>>, vector<36x256xf32>
    %8 = arith.mulf %6, %7 : vector<36x256xf32>
    %c0_9 = arith.constant 0 : index
    %c0_10 = arith.constant 0 : index
    %9 = vector.load %arg7[%c0_9, %c0_10] : memref<4x1xf32, #tpu.memory_space<vmem>>, vector<4x1xf32>
    %c0_11 = arith.constant 0 : index
    %c0_12 = arith.constant 0 : index
    %10 = vector.load %arg6[%c0_11, %c0_12] : memref<4x36xf32, #tpu.memory_space<vmem>>, vector<4x36xf32>
    %cst_13 = arith.constant dense<0.000000e+00> : vector<4x256xf32>
    %11 = tpu.matmul %10, %8, %cst_13 {dimension_numbers = #tpu.dot_dimension_numbers<[1], [0], [0], [1], [0, 0, 1, 1], [], []>} : vector<4x36xf32>, vector<36x256xf32>, vector<4x256xf32> -> vector<4x256xf32>
    %12 = vector.broadcast %9 : vector<4x1xf32> to vector<4x256xf32>
    %13 = arith.mulf %12, %11 : vector<4x256xf32>
    %c0_14 = arith.constant 0 : index
    %c0_15 = arith.constant 0 : index
    %14 = vector.load %arg8[%c0_14, %c0_15] : memref<4x1xf32, #tpu.memory_space<vmem>>, vector<4x1xf32>
    %15 = vector.broadcast %14 : vector<4x1xf32> to vector<4x256xf32>
    %16 = arith.addf %13, %15 : vector<4x256xf32>
    %c0_16 = arith.constant 0 : index
    %c0_17 = arith.constant 0 : index
    %17 = vector.load %arg9[%c0_16, %c0_17] : memref<4x4xf32, #tpu.memory_space<vmem>>, vector<4x4xf32>
    %cst_18 = arith.constant dense<0.000000e+00> : vector<4x256xf32>
    %18 = tpu.matmul %17, %1, %cst_18 {dimension_numbers = #tpu.dot_dimension_numbers<[1], [0], [0], [1], [0, 0, 1, 1], [], []>} : vector<4x4xf32>, vector<4x256xf32>, vector<4x256xf32> -> vector<4x256xf32>
    %c0_19 = arith.constant 0 : index
    %c0_20 = arith.constant 0 : index
    %19 = vector.load %arg10[%c0_19, %c0_20] : memref<4x4xf32, #tpu.memory_space<vmem>>, vector<4x4xf32>
    %cst_21 = arith.constant dense<0.000000e+00> : vector<4x256xf32>
    %20 = tpu.matmul %19, %16, %cst_21 {dimension_numbers = #tpu.dot_dimension_numbers<[1], [0], [0], [1], [0, 0, 1, 1], [], []>} : vector<4x4xf32>, vector<4x256xf32>, vector<4x256xf32> -> vector<4x256xf32>
    %21 = arith.addf %18, %20 : vector<4x256xf32>
    %c0_22 = arith.constant 0 : index
    %c0_23 = arith.constant 0 : index
    %22 = vector.load %arg11[%c0_22, %c0_23] : memref<4x1xf32, #tpu.memory_space<vmem>>, vector<4x1xf32>
    %23 = vector.broadcast %22 : vector<4x1xf32> to vector<4x256xf32>
    %24 = arith.addf %21, %23 : vector<4x256xf32>
    %c0_24 = arith.constant 0 : index
    %c0_25 = arith.constant 0 : index
    %25 = vector.load %arg12[%c0_24, %c0_25] : memref<4x4xf32, #tpu.memory_space<vmem>>, vector<4x4xf32>
    %cst_26 = arith.constant dense<0.000000e+00> : vector<4x256xf32>
    %26 = tpu.matmul %25, %1, %cst_26 {dimension_numbers = #tpu.dot_dimension_numbers<[1], [0], [0], [1], [0, 0, 1, 1], [], []>} : vector<4x4xf32>, vector<4x256xf32>, vector<4x256xf32> -> vector<4x256xf32>
    %c0_27 = arith.constant 0 : index
    %c0_28 = arith.constant 0 : index
    %27 = vector.load %arg13[%c0_27, %c0_28] : memref<4x4xf32, #tpu.memory_space<vmem>>, vector<4x4xf32>
    %cst_29 = arith.constant dense<0.000000e+00> : vector<4x256xf32>
    %28 = tpu.matmul %27, %24, %cst_29 {dimension_numbers = #tpu.dot_dimension_numbers<[1], [0], [0], [1], [0, 0, 1, 1], [], []>} : vector<4x4xf32>, vector<4x256xf32>, vector<4x256xf32> -> vector<4x256xf32>
    %29 = arith.addf %26, %28 : vector<4x256xf32>
    %30 = math.tanh %29 : vector<4x256xf32>
    %c0_30 = arith.constant 0 : index
    %c0_31 = arith.constant 0 : index
    %31 = vector.load %arg14[%c0_30, %c0_31] : memref<4x256xf32, #tpu.memory_space<vmem>>, vector<4x256xf32>
    tpu.vector_store %arg14[%c0_30, %c0_31], %30 {strides = array<i32>} : memref<4x256xf32, #tpu.memory_space<vmem>>, vector<4x256xf32>,
    return
  }
  func.func @transform_0(%arg0: i32) -> (i32, i32) {
    %c0_i32 = arith.constant 0 : i32
    %c0_i32_0 = arith.constant 0 : i32
    return %c0_i32, %arg0 : i32, i32
  }
  func.func @transform_1(%arg0: i32) -> (i32, i32) {
    %c0_i32 = arith.constant 0 : i32
    %c0_i32_0 = arith.constant 0 : i32
    return %c0_i32, %arg0 : i32, i32
  }
  func.func @transform_2(%arg0: i32) -> (i32, i32) {
    %c0_i32 = arith.constant 0 : i32
    %c0_i32_0 = arith.constant 0 : i32
    return %c0_i32, %arg0 : i32, i32
  }
  func.func @transform_3(%arg0: i32) -> (i32, i32) {
    %c0_i32 = arith.constant 0 : i32
    %c0_i32_0 = arith.constant 0 : i32
    %c0_i32_1 = arith.constant 0 : i32
    return %c0_i32, %c0_i32_0 : i32, i32
  }
  func.func @transform_4(%arg0: i32) -> (i32, i32) {
    %c0_i32 = arith.constant 0 : i32
    %c0_i32_0 = arith.constant 0 : i32
    %c0_i32_1 = arith.constant 0 : i32
    return %c0_i32, %c0_i32_0 : i32, i32
  }
  func.func @transform_5(%arg0: i32) -> (i32, i32) {
    %c0_i32 = arith.constant 0 : i32
    %c0_i32_0 = arith.constant 0 : i32
    %c0_i32_1 = arith.constant 0 : i32
    return %c0_i32, %c0_i32_0 : i32, i32
  }
  func.func @transform_6(%arg0: i32) -> (i32, i32) {
    %c0_i32 = arith.constant 0 : i32
    %c0_i32_0 = arith.constant 0 : i32
    %c0_i32_1 = arith.constant 0 : i32
    return %c0_i32, %c0_i32_0 : i32, i32
  }
  func.func @transform_7(%arg0: i32) -> (i32, i32) {
    %c0_i32 = arith.constant 0 : i32
    %c0_i32_0 = arith.constant 0 : i32
    %c0_i32_1 = arith.constant 0 : i32
    return %c0_i32, %c0_i32_0 : i32, i32
  }
  func.func @transform_8(%arg0: i32) -> (i32, i32) {
    %c0_i32 = arith.constant 0 : i32
    %c0_i32_0 = arith.constant 0 : i32
    %c0_i32_1 = arith.constant 0 : i32
    return %c0_i32, %c0_i32_0 : i32, i32
  }
  func.func @transform_9(%arg0: i32) -> (i32, i32) {
    %c0_i32 = arith.constant 0 : i32
    %c0_i32_0 = arith.constant 0 : i32
    %c0_i32_1 = arith.constant 0 : i32
    return %c0_i32, %c0_i32_0 : i32, i32
  }
  func.func @transform_10(%arg0: i32) -> (i32, i32) {
    %c0_i32 = arith.constant 0 : i32
    %c0_i32_0 = arith.constant 0 : i32
    %c0_i32_1 = arith.constant 0 : i32
    return %c0_i32, %c0_i32_0 : i32, i32
  }
  func.func @transform_11(%arg0: i32) -> (i32, i32) {
    %c0_i32 = arith.constant 0 : i32
    %c0_i32_0 = arith.constant 0 : i32
    %c0_i32_1 = arith.constant 0 : i32
    return %c0_i32, %c0_i32_0 : i32, i32
  }
  func.func @transform_12(%arg0: i32) -> (i32, i32) {
    %c0_i32 = arith.constant 0 : i32
    %c0_i32_0 = arith.constant 0 : i32
    %c0_i32_1 = arith.constant 0 : i32
    return %c0_i32, %c0_i32_0 : i32, i32
  }
  func.func @transform_13(%arg0: i32) -> (i32, i32) {
    %c0_i32 = arith.constant 0 : i32
    %c0_i32_0 = arith.constant 0 : i32
    return %c0_i32, %arg0 : i32, i32
  }
}

</mosaic_0001>

<bundles_post_ra>
// kernel: tpu_custom_call.1
= control target key start
LH: loop header
LB: loop body
LE: loop exit
PB: predicated region body
PF: predicated region fallthrough
CT: control target
= control target key end

     0   :  { %s1803_s0 = inlined_call_operand.hbm [shape: f32[100,512], index: 0, kind: input, shape index: {}]   ;;  %s1804_s1 = inlined_call_operand.hbm [shape: f32[4,512], index: 1, kind: input, shape index: {}]   ;;  %s1805_s2 = inlined_call_operand.hbm [shape: f32[36,512], index: 2, kind: input, shape index: {}]   ;;  %s1806_s3 = inlined_call_operand.vmem [shape: f32[36,100], index: 3, kind: input, shape index: {}]   ;;  %s1807_s4 = inlined_call_operand.vmem [shape: f32[36,1], index: 4, kind: input, shape index: {}]   ;;  %s1808_s5 = inlined_call_operand.vmem [shape: f32[4,36], index: 5, kind: input, shape index: {}]   ;;  %s1809_s6 = inlined_call_operand.vmem [shape: f32[4,1], index: 6, kind: input, shape index: {}]   ;;  %s1810_s7 = inlined_call_operand.vmem [shape: f32[4,1], index: 7, kind: input, shape index: {}]   ;;  %s1811_s8 = inlined_call_operand.vmem [shape: f32[4,4], index: 8, kind: input, shape index: {}]   ;;  %s1812_s9 = inlined_call_operand.vmem [shape: f32[4,4], index: 9, kind: input, shape index: {}]   ;;  %s1813_s10 = inlined_call_operand.vmem [shape: f32[4,1], index: 10, kind: input, shape index: {}]   ;;  %s1814_s11 = inlined_call_operand.vmem [shape: f32[4,4], index: 11, kind: input, shape index: {}]   ;;  %s1815_s12 = inlined_call_operand.vmem [shape: f32[4,4], index: 12, kind: input, shape index: {}]   ;;  %s1816_s13 = inlined_call_operand.hbm [shape: f32[4,512], index: 13, kind: output, shape index: {}]  }
   0x1   :  { %1826 = sst [smem:[#allocation19_spill]] %s1804_s1 }
   0x2   :  { %1827 = sst [smem:[#allocation20_spill]] %s1811_s8 }
   0x3   :  { %1828 = sst [smem:[#allocation21_spill]] %s1812_s9 }
   0x4   :  { %1829 = sst [smem:[#allocation22_spill]] %s1814_s11 }
   0x5   :  { %1830 = sst [smem:[#allocation23_spill]] %s1815_s12 }
   0x6   :  { %1831 = sst [smem:[#allocation24_spill]] %s1816_s13 }
   0x7   :  { %18 = vsyncpa [#allocation3], 0 }
   0x8   :  { %20 = vsyncpa [#allocation3 + $0x1], 0 }
   0x9   :  { %21 = vsyncpa [#allocation6], 0 }
   0xa   :  { %23 = vsyncpa [#allocation6 + $0x1], 0 }
   0xb   :  { %24 = vsyncpa [#allocation4], 0 }
   0xc   :  { %26 = vsyncpa [#allocation4 + $0x1], 0  ;;  %s1491_s25 = smov 0   ;;  %s1493_s26 = smov 0  }
   0xd   :  { %s1495_s27 = smov 0   ;;  %s1497_s28 = smov 0  }
   0xe LB: > { %1832 = sst [smem:[#allocation12_spill]] %s1403_s25  ;;  %s1512_s29 = sadd.s32 4294967295, %s1415_s28   ;;  %s1415_s28 = sphi %s1497_s28, %s1856_s28   ;;  %s1411_s27 = sphi %s1495_s27, %s1858_s27   ;;  %s1407_s26 = sphi %s1493_s26, %s1860_s26   ;;  %s1403_s25 = sphi %s1491_s25, %s1859_s25  }
   0xf   : > { %1833 = sst [smem:[#allocation13_spill]] %s1411_s27  ;;  %s1130_s30 = sadd.s32 4294967294, %s1415_s28  }
  0x10   : > { %1834 = sst [smem:[#allocation14_spill]] %s1415_s28  ;;  %s1516_s14 = sadd.s32 1, %s1415_s28  }
  0x11   : > { %1835 = sst [smem:[#allocation15_spill]] %s1516_s14  ;;  %s39_s15 = sadd.s32 1, %s1411_s27 }
  0x12   : > { %s36_s16 = ssub.s32 %s1415_s28, %s1516_s14  ;;  %p46_p0 = scmp.ne.s32.totalorder %s1411_s27, %s1407_s26 }
  0x13   : > { %p37_p1 = scmp.eq.s32.totalorder %s36_s16, 0  ;;  %p47_p2 = scmp.eq.s32.totalorder %s1415_s28, 0 }
  0x14   : > { %p52_p3 = scmp.ne.s32.totalorder %s1407_s26, %s1403_s25  ;;  %p53_p4 = scmp.eq.s32.totalorder %s1512_s29, 0 }
  0x15   : > { %s1528_s17 = scalar_select %p37_p1, %s1411_s27, %s39_s15  }
  0x16   : > { %p48_p5 = por %p47_p2, %p46_p0  ;;  %p1530_p6 = por %p53_p4, %p52_p3 }
  0x17   : > { %1836 = sst [smem:[#allocation16_spill]] %s1528_s17  ;;  %p338_p7 = scmp.eq.s32.totalorder %s1512_s29, 1 }
  0x18   : > { %p344_p8 = scmp.eq.s32.totalorder %s1130_s30, 1  ;;  %p1132_p9 = scmp.ge.s32.totalorder %s1415_s28, 2 }
  0x19   : > { %p1210_p10 = scmp.lt.s32.totalorder %s1415_s28, 2  ;;  %p1537_p11 = por %p338_p7, %p46_p0 }
  0x1a   : > { %p1541_p12 = por %p344_p8, %p52_p3  ;;  %s1546_s21 = sand.u32 1, %s1411_s27  }
  0x1b   : > { %s1838_s19 = scalar_select %p1537_p11, 1, 0 }
  0x1c   : > { %s1840_s20 = scalar_select %p1541_p12, 1, 0 }
  0x1d   : > { %1839 = sst [smem:[#allocation17_spill]] %s1838_s19  ;;  %p1548_p13 = pnand %p1210_p10, %p48_p5 }
  0x1e   : > { %1841 = sst [smem:[#allocation18_spill]] %s1840_s20  ;;  %s416_s24 = sand.u32 1, %s1415_s28  }
  0x1f   : > { %s1135_s30 = sshll.u32 %s1546_s21, 3  ;;  %s1181_s15 = sshll.u32 %s1415_s28, 3 }
  0x20   : > { %s1843_s1 = sld [smem:[#allocation19_spill]]  ;;  %s420_s20 = scalar_lea.vmem [#allocation5], %s1135_s30 }
  0x21   : > { %s429_s27 = sshll.u32 %s420_s20, 4  ;;  %s1559_s19 = scalar_lea.sflag [#allocation6], %s416_s24  ;;  %s430_s27 = int_to_ptr.vmem [resolvable:$true] %s429_s27 }
  0x22   : > { %p1259_p1 = pneg %p1548_p13 }
  0x26   : > { %s425_s14 = scalar_lea.hbm %s1843_s1, %s1181_s15 }
  0x27   : > { %s427_s25 = sshll.u32 %s425_s14, 4  ;;  %s1262_s14 = scalar_lea.hbm %s1843_s1, 16  ;;  %s428_s25 = int_to_ptr.hbm [resolvable:$true] %s427_s25 }
  0x28   : > { %s1255_s13 = sshra.s32 %s428_s25, 4  ;;  %s1256_s13 = int_to_ptr.hbm [resolvable:$true] %s1255_s13 }
  0x29   : > { %s1257_s11 = scalar_lea.hbm %s1256_s13, 8  ;;  %p1263_p4 = scmp.lt.s32.totalorder %s1256_s13, %s1843_s1 }
  0x2a   : > { %p1258_p0 = scmp.ne.s32.totalorder %s1256_s13, %s1257_s11  ;;  %p1264_p5 = scmp.lt.s32.totalorder %s1262_s14, %s1257_s11 }
  0x2c   : > { %p1260_p2 = pnand %p1259_p1, %p1258_p0  ;;  %p1265_p7 = por %p1264_p5, %p1263_p4 }
  0x2e   : > { %p1261_p3 = pneg %p1260_p2 }
  0x30   : > { %p1266_p8 = pnand %p1265_p7, %p1261_p3 }
  0x32   : > { %1269 = shalt.err (!%p1266_p8)
}
  0x33   : > { %1202 = dma.hbm_to_vmem [thread:$0]  (!%p1548_p13), %s428_s25, 128, %s430_s27, %s1559_s19  }
  0x34   : > { %s1185_s23 = smul.u32 80, %s1546_s21  ;;  %p1140_p10 = scmp.ge.s32.totalorder %s1415_s28, 1 }
  0x35   : > { %p456_p0 = scmp.lt.s32.totalorder %s1415_s28, 3  ;;  %s1180_s15 = sshll.u32 %s1415_s28, 4 }
  0x36   : > { %s1582_s11 = scalar_lea.vmem [#allocation7], %s1185_s23  ;;  %s403_s14 = scalar_lea.hbm %s1803_s0, %s1180_s15 }
  0x37   : > { %p1578_p2 = pnand %p1140_p10, %p456_p0  ;;  %s1845_s30 = smul.u32 208, %s1546_s21 }
  0x38   : > { %s404_s27 = sshll.u32 %s403_s14, 4  ;;  %s395_s1 = scalar_lea.sflag [#allocation3], %s1546_s21  ;;  %s405_s27 = int_to_ptr.hbm [resolvable:$true] %s404_s27 }
  0x39   : > { %s398_s20 = scalar_lea.vmem [#allocation2], %s1845_s30  ;;  %s1285_s12 = sshra.s32 %s405_s27, 4  ;;  %s1286_s12 = int_to_ptr.hbm [resolvable:$true] %s1285_s12 }
  0x3a   : > { %s406_s25 = sshll.u32 %s398_s20, 4  ;;  %s1287_s8 = scalar_lea.hbm %s1286_s12, 208  ;;  %s407_s25 = int_to_ptr.vmem [resolvable:$true] %s406_s25 }
  0x3b   : > { %p1288_p3 = scmp.ne.s32.totalorder %s1286_s12, %s1287_s8  ;;  %s1292_s16 = scalar_lea.hbm %s1803_s0, 416 }
  0x3c   : > { %p1293_p7 = scmp.lt.s32.totalorder %s1286_s12, %s1803_s0  ;;  %p1294_p8 = scmp.lt.s32.totalorder %s1292_s16, %s1287_s8 }
  0x3d   : > { %p1290_p4 = pnand %p1288_p3, %p1259_p1 }
  0x3e   : > { %p1295_p10 = por %p1294_p8, %p1293_p7 }
  0x3f   : > { %p1291_p5 = pneg %p1290_p4 }
  0x41   : > { %p1296_p0 = pnand %p1295_p10, %p1291_p5 }
  0x43   : > { %1299 = shalt.err (!%p1296_p0)
}
  0x44   : > { %s1417_s21 = smov 512   ;;  %s1418_s14 = smov 256  }
  0x45   : > { %s1419_s30 = smov 16   ;;  %s1846_s20 = sshll.u32 %s1582_s11, 4  ;;  %s449_s20 = int_to_ptr.vmem [resolvable:$true] %s1846_s20 }
  0x46   : > { %1199 = dma.hbm_to_vmem [thread:$0]  (!%p1548_p13), %s405_s27, 3328, %s407_s25, %s395_s1, %s1417_s21, %s1418_s14, %s1419_s30  }
  0x47   : > { %s445_s9 = scalar_lea.hbm %s1805_s2, %s1180_s15  ;;  %s1322_s1 = scalar_lea.hbm %s1805_s2, 160 }
  0x48   : > { %s446_s28 = sshll.u32 %s445_s9, 4  ;;  %s447_s28 = int_to_ptr.hbm [resolvable:$true] %s446_s28 }
  0x49   : > { %s1315_s8 = sshra.s32 %s447_s28, 4  ;;  %s1316_s8 = int_to_ptr.hbm [resolvable:$true] %s1315_s8 }
  0x4a   : > { %s1317_s12 = scalar_lea.hbm %s1316_s8, 80  ;;  %p1323_p7 = scmp.lt.s32.totalorder %s1316_s8, %s1805_s2 }
  0x4b   : > { %p1318_p3 = scmp.ne.s32.totalorder %s1316_s8, %s1317_s12  ;;  %p1324_p8 = scmp.lt.s32.totalorder %s1322_s1, %s1317_s12 }
  0x4d   : > { %p1320_p4 = pnand %p1318_p3, %p1259_p1  ;;  %p1325_p10 = por %p1324_p8, %p1323_p7 }
  0x4f   : > { %p1321_p5 = pneg %p1320_p4 }
  0x51   : > { %p1326_p0 = pnand %p1325_p10, %p1321_p5 }
  0x53   : > { %1329 = shalt.err (!%p1326_p0)
}
  0x54   : > { %1205 = dma.hbm_to_vmem [thread:$0]  (!%p1548_p13), %s447_s28, 1280, %s449_s20, %s1559_s19, %s1417_s21, %s1418_s14, %s1419_s30  }
  0x55   : > { %460 = sbr.rel (%p1578_p2) target bundleno = 728 (0x2d8), region = 72  ;;  %s1623_s9 = sand.u32 (!%p1578_p2), 1, %s1407_s26  }
  0x56   : > { %s1186_s15 = smul.u32 (!%p1578_p2), 208, %s1623_s9  ;;  %s463_s27 = scalar_lea.sflag (!%p1578_p2), [#allocation3], %s1623_s9 }
  0x58   : > { %s1627_s24 = scalar_lea.vmem (!%p1578_p2), [#allocation2], %s1186_s15 }
  0x5a   : > { %1390 = dma.done.wait (%p1530_p6), %s463_s27, 3328  }
  0x5b   : > { %1392 = vsyncadd (%p1530_p6), %s463_s27, 4294963968  ;;  %s472_s19 = sand.u32 1, %s1512_s29   ;;  %s1141_s22 = sshll.u32 %s1623_s9, 3 }
  0x5c   : > { %s473_s13 = scalar_lea.sflag [#allocation6], %s472_s19  ;;  %s1637_s21 = scalar_lea.vmem [#allocation5], %s1141_s22 }
  0x5d   : > { %1394 = dma.done.wait (%p1530_p6), %s473_s13, 1408  }
  0x5e   : > { %1396 = vsyncadd (%p1530_p6), %s473_s13, 4294965888  ;;  %vm622_vm0 = vcmask 1043456   ;;  %v568_v0 = vld [vmem:[%s1627_s24 + $0xc0] sm:$0xf]  ;;  %v569_v1 = vld [vmem:[%s1627_s24 + $0xc8] sm:$0xf] }
  0x5f   : > { %v566_v2 = vld [vmem:[%s1627_s24 + $0xb0] sm:$0xff]  ;;  %1143 = vmatpush.msk.msra.mxu0 %vm622_vm0, %v568_v0  ;;  %1149 = vmatpush.msk.msra.mxu1 %vm622_vm0, %v569_v1  ;;  %v567_v3 = vld [vmem:[%s1627_s24 + $0xb8] sm:$0xff]  ;;  %v564_v4 = vld [vmem:[%s1627_s24 + $0xa0] sm:$0xff]  ;;  %v1420_v8 = vmov 0   ;;  %vm606_vm1 = vcmask 818176   ;;  %s1187_s16 = smul.u32 80, %s1623_s9 }
  0x60   : > { %v565_v5 = vld [vmem:[%s1627_s24 + $0xa8] sm:$0xff]  ;;  %v562_v6 = vld [vmem:[%s1627_s24 + $0x90] sm:$0xff]  ;;  %v563_v7 = vld [vmem:[%s1627_s24 + $0x98] sm:$0xff]  ;;  %1249 = vset.pattern.permute.xlu1 %v1420_v8  ;;  %1248 = vset.pattern.permute.xlu0 %v1420_v8  ;;  %vm715_vm2 = vcmask 293888   ;;  %s1847_s27 = sld [smem:[#allocation21_spill]]  ;;  %vm782_vm3 = vcmask 31744  }
  0x61   : > { %633 = vmatpush.msra.mxu0 %v566_v2  ;;  %665 = vmatpush.msra.mxu1 %v567_v3  ;;  %v560_v9 = vld [vmem:[%s1627_s24 + $0x80] sm:$0xff]  ;;  %v561_v10 = vld [vmem:[%s1627_s24 + $0x88] sm:$0xff]  ;;  %v558_v11 = vld [vmem:[%s1627_s24 + $0x70] sm:$0xff]  ;;  %s1721_s17 = scalar_lea.vmem [#allocation7], %s1187_s16  ;;  %s1848_s19 = sld [smem:[#allocation20_spill]] }
  0x62   : > { %1250 = vset.pattern.permute.xlu2 %v1420_v8  ;;  %v559_v12 = vld [vmem:[%s1627_s24 + $0x78] sm:$0xff]  ;;  %v556_v14 = vld [vmem:[%s1627_s24 + $0x60] sm:$0xff]  ;;  %v557_v15 = vld [vmem:[%s1627_s24 + $0x68] sm:$0xff]  ;;  %s1849_s14 = sld [smem:[#allocation23_spill]]  ;;  %s1183_s28 = sshll.u32 %s1512_s29, 3 }
  0x63   : > { %634 = vmatpush.msra.mxu0 %v564_v4  ;;  %666 = vmatpush.msra.mxu1 %v565_v5  ;;  %v578_v13 = vld [vmem:[%s1807_s4 + $0x10] sm:$0xff]  ;;  %v580_v16 = vld [vmem:[%s1807_s4 + $0x20] sm:$0xf]  ;;  %v554_v17 = vld [vmem:[%s1627_s24 + $0x50] sm:$0xff]  ;;  %s1850_s23 = sld [smem:[#allocation22_spill]]  ;;  %s539_s11 = scalar_lea.vmem [#allocation8], %s1141_s22 }
  0x64   : > { %593 = vperm.xlu1 %1249, %v578_v13   ;;  %v555_v18 = vld [vmem:[%s1627_s24 + $0x58] sm:$0xff]  ;;  %603 = vperm.xlu0 %1248, %v580_v16   ;;  %v552_v19 = vld [vmem:[%s1627_s24 + $0x40] sm:$0xff]  ;;  %v553_v20 = vld [vmem:[%s1627_s24 + $0x48] sm:$0xff]  ;;  %s1851_s16 = sld [smem:[#allocation24_spill]]  ;;  %s1014_s25 = sshll.u32 %s539_s11, 4  ;;  %s1015_s25 = int_to_ptr.vmem [resolvable:$true] %s1014_s25 }
  0x65   : > { %635 = vmatpush.msra.mxu0 %v562_v6  ;;  %667 = vmatpush.msra.mxu1 %v563_v7  ;;  %v577_v21 = vld [vmem:[%s1807_s4 + $0x8] sm:$0xff]  ;;  %v551_v23 = vld [vmem:[%s1627_s24 + $0x38] sm:$0xff]  ;;  %v549_v25 = vld [vmem:[%s1627_s24 + $0x28] sm:$0xff]  ;;  %s1001_s29 = scalar_lea.sflag [#allocation4], %s1623_s9 }
  0x66   : > { %v550_v22 = vld [vmem:[%s1627_s24 + $0x30] sm:$0xff]  ;;  %v548_v24 = vld [vmem:[%s1627_s24 + $0x20] sm:$0xff]  ;;  %v547_v28 = vld [vmem:[%s1627_s24 + $0x18] sm:$0xff] }
  0x67   : > { %636 = vmatpush.msra.mxu0 %v560_v9  ;;  %668 = vmatpush.msra.mxu1 %v561_v10  ;;  %v579_v26 = vld [vmem:[%s1807_s4 + $0x18] sm:$0xff]  ;;  %v545_v30 = vld [vmem:[%s1627_s24 + $0x8] sm:$0xff]  ;;  %v572_v35 = vld [vmem:[%s1806_s3 + $0x8] sm:$0xff] }
  0x68   : > { %v546_v27 = vld [vmem:[%s1627_s24 + $0x10] sm:$0xff]  ;;  %v544_v29 = vld [vmem:[%s1627_s24] sm:$0xff]  ;;  %v571_v31 = vld [vmem:[%s1806_s3] sm:$0xff] }
  0x69   : > { %637 = vmatpush.msra.mxu0 %v558_v11  ;;  %669 = vmatpush.msra.mxu1 %v559_v12  ;;  %v576_v32 = vld [vmem:[%s1807_s4] sm:$0xff]  ;;  %v573_v37 = vld [vmem:[%s1806_s3 + $0x10] sm:$0xff]  ;;  %v574_v38 = vld [vmem:[%s1806_s3 + $0x18] sm:$0xff] }
  0x6a   : > { %v772_v33 = vld [vmem:[%s1810_s7] sm:$0xf]  ;;  %583 = vperm.xlu2 %1250, %v576_v32   ;;  %v701_v53 = vld [vmem:[%s1721_s17 + $0x40] sm:$0xf]  ;;  %v699_v60 = vld [vmem:[%s1721_s17 + $0x30] sm:$0xff] }
  0x6b   : > { %638 = vmatpush.msra.mxu0 %v556_v14  ;;  %670 = vmatpush.msra.mxu1 %v557_v15  ;;  %v883_v34 = vld [vmem:[%s1813_s10] sm:$0xf]  ;;  %v697_v4 = vld [vmem:[%s1721_s17 + $0x20] sm:$0xff]  ;;  %v695_v10 = vld [vmem:[%s1721_s17 + $0x10] sm:$0xff] }
  0x6c   : > { %588 = vperm.xlu1 %1249, %v577_v21   ;;  %598 = vperm.xlu0 %1248, %v579_v26   ;;  %v713_v36 = vld [vmem:[%s1809_s6] sm:$0xf]  ;;  %v693_v15 = vld [vmem:[%s1721_s17] sm:$0xff] }
  0x6d   : > { %639 = vmatpush.msra.mxu0 %v554_v17  ;;  %671 = vmatpush.msra.mxu1 %v555_v18  ;;  %v575_v39 = vld [vmem:[%s1806_s3 + $0x20] sm:$0xf] }
  0x6e   : > { %v702_v54 = vld [vmem:[%s1721_s17 + $0x48] sm:$0xf]  ;;  %v700_v61 = vld [vmem:[%s1721_s17 + $0x38] sm:$0xff] }
  0x6f   : > { %640 = vmatpush.msra.mxu0 %v552_v19  ;;  %672 = vmatpush.msra.mxu1 %v553_v20  ;;  %v698_v5 = vld [vmem:[%s1721_s17 + $0x28] sm:$0xff]  ;;  %v696_v11 = vld [vmem:[%s1721_s17 + $0x18] sm:$0xff] }
  0x70   : > { %v694_v16 = vld [vmem:[%s1721_s17 + $0x8] sm:$0xff]  ;;  %s1012_s17 = scalar_lea.hbm %s1851_s16, %s1183_s28 }
  0x71   : > { %641 = vmatpush.msra.mxu0 %v550_v22  ;;  %673 = vmatpush.msra.mxu1 %v551_v23  ;;  %v714_v21 = vld [vmem:[%s1808_s5] sm:$0xf]  ;;  %v570_v22 = vld [vmem:[%s1637_s21] sm:$0xff]  ;;  %s1016_s15 = sshll.u32 %s1012_s17, 4  ;;  %s1017_s15 = int_to_ptr.hbm [resolvable:$true] %s1016_s15 }
  0x72   : > { %767 = vperm.xlu2 %1250, %v713_v36   ;;  %833 = vst [vmem:[#allocation1] ss:$2 sm:$0xff] %v570_v22 }
  0x73   : > { %642 = vmatpush.msra.mxu0 %v548_v24  ;;  %674 = vmatpush.msra.mxu1 %v549_v25 }
  0x74   : > { %886 = vperm.xlu1 %1249, %v883_v34   ;;  %775 = vperm.xlu0 %1248, %v772_v33   ;;  %v781_v33 = vld [vmem:[%s1847_s27] sm:$0xf]  ;;  %s1359_s27 = sshra.s32 %s1017_s15, 4  ;;  %s1360_s27 = int_to_ptr.hbm [resolvable:$true] %s1359_s27 }
  0x75   : > { %643 = vmatpush.msra.mxu0 %v546_v27  ;;  %675 = vmatpush.msra.mxu1 %v547_v28  ;;  %v780_v34 = vld [vmem:[%s1848_s19] sm:$0xf]  ;;  %s1361_s21 = scalar_lea.hbm %s1360_s27, 8  ;;  %s1365_s19 = scalar_lea.hbm %s1851_s16, 16 }
  0x76   : > { %p1362_p6 = scmp.ne.s32.totalorder %s1360_s27, %s1361_s21  ;;  %p1366_p2 = scmp.lt.s32.totalorder %s1360_s27, %s1851_s16 }
  0x77   : > { %644 = vmatpush.msra.mxu0 %v544_v29  ;;  %676 = vmatpush.msra.mxu1 %v545_v30  ;;  %p1367_p3 = scmp.lt.s32.totalorder %s1365_s19, %s1361_s21 }
  0x78   : > { %1144 = vmatmul.msk.f32.vlgmr.msra.gmra.mxu0 %vm606_vm1, %v571_v31  ;;  %1150 = vmatmul.msk.f32.vlgmr.msra.gmra.mxu1 %vm606_vm1, %v571_v31  ;;  %p1363_p13 = pnand %p1362_p6, %p1537_p11 }
  0x79   : > { %v834_v23 = vld.sshfl [vmem:[#allocation1] sm:$0xff pattern:$0x75316420]  ;;  %v835_v24 = vld.sshfl [vmem:[#allocation1 + $0x8] sm:$0xff pattern:$0x75316420]  ;;  %p1368_p4 = por %p1367_p3, %p1366_p2 }
  0x7a   : > { %942 = vst [vmem:[#allocation1] ss:$2 sm:$0xff] %v570_v22  ;;  %p1364_p1 = pneg %p1363_p13 }
  0x7c   : > { %p1369_p5 = pnand %p1368_p4, %p1364_p1 }
  0x80   : > { %1145 = vmatmul.msk.f32.gmra.mxu0 %vm606_vm1, %v572_v35  ;;  %1151 = vmatmul.msk.f32.gmra.mxu1 %vm606_vm1, %v572_v35 }
  0x88   : > { %1146 = vmatmul.msk.f32.gmra.mxu0 %vm606_vm1, %v573_v37  ;;  %1152 = vmatmul.msk.f32.gmra.mxu1 %vm606_vm1, %v573_v37 }
  0x90   : > { %1147 = vmatmul.msk.f32.gmra.mxu0 %vm606_vm1, %v574_v38  ;;  %1153 = vmatmul.msk.f32.gmra.mxu1 %vm606_vm1, %v574_v38 }
  0x98   : > { %1148 = vmatmul.msk.f32.gmra.mxu0 %vm606_vm1, %v575_v39  ;;  %1154 = vmatmul.msk.f32.gmra.mxu1 %vm606_vm1, %v575_v39 }
  0xc4   : > { %v584_v2 = vpop.permute.xlu2 %583 }
  0xcc   : > { %v768_v25 = vpop.permute.xlu2 %767 }
  0xd6   : > { %v604_v46 = vpop.permute.xlu0 %603  ;;  %v594_v47 = vpop.permute.xlu1 %593 }
  0xde   : > { %v599_v50 = vpop.permute.xlu0 %598  ;;  %v589_v59 = vpop.permute.xlu1 %588 }
  0xe6   : > { %v776_v30 = vpop.permute.xlu0 %775 }
  0xf5   : > { %v646_v40 = vpop.f32.mrf.mxu0  ;;  %v678_v41 = vpop.f32.mrf.mxu1 }
  0xf6   : > { %v647_v9 = vadd.f32 %v646_v40, %v584_v2  ;;  %v679_v12 = vadd.f32 %v678_v41, %v584_v2  ;;  %v887_v41 = vpop.permute.xlu1 %886 }
  0xf8   : > { %v703_v19 = vmul.f32 %v693_v15, %v647_v9  ;;  %v704_v20 = vmul.f32 %v694_v16, %v679_v12 }
  0xfd   : > { %v649_v42 = vpop.f32.mrf.mxu0  ;;  %v681_v43 = vpop.f32.mrf.mxu1 }
  0xfe   : > { %v650_v3 = vadd.f32 %v649_v42, %v589_v59  ;;  %v682_v6 = vadd.f32 %v681_v43, %v589_v59 }
 0x100   : > { %v705_v17 = vmul.f32 %v695_v10, %v650_v3  ;;  %v706_v18 = vmul.f32 %v696_v11, %v682_v6 }
 0x105   : > { %v652_v44 = vpop.f32.mrf.mxu0  ;;  %v684_v45 = vpop.f32.mrf.mxu1 }
 0x106   : > { %v653_v62 = vadd.f32 %v652_v44, %v594_v47  ;;  %v685_v63 = vadd.f32 %v684_v45, %v594_v47  ;;  %v892_v44 = vld [vmem:[%s1849_s14] sm:$0xf]  ;;  %v944_v45 = vld.sshfl [vmem:[#allocation1 + $0x8] sm:$0xff pattern:$0x75316420] }
 0x107   : > { %v891_v47 = vld [vmem:[%s1850_s23] sm:$0xf] }
 0x108   : > { %v707_v13 = vmul.f32 %v697_v4, %v653_v62  ;;  %v708_v14 = vmul.f32 %v698_v5, %v685_v63 }
 0x10d   : > { %v655_v48 = vpop.f32.mrf.mxu0  ;;  %v687_v49 = vpop.f32.mrf.mxu1 }
 0x10e   : > { %v656_v55 = vadd.f32 %v655_v48, %v599_v50  ;;  %v688_v56 = vadd.f32 %v687_v49, %v599_v50 }
 0x110   : > { %v709_v7 = vmul.f32 %v699_v60, %v656_v55  ;;  %v710_v8 = vmul.f32 %v700_v61, %v688_v56 }
 0x115   : > { %v658_v51 = vpop.f32.mrf.mxu0  ;;  %v690_v52 = vpop.f32.mrf.mxu1 }
 0x116   : > { %v659_v57 = vadd.f32 %v658_v51, %v604_v46  ;;  %v691_v58 = vadd.f32 %v690_v52, %v604_v46  ;;  %v943_v46 = vld.sshfl [vmem:[#allocation1] sm:$0xff pattern:$0x75316420] }
 0x118   : > { %v711_v0 = vmul.f32 %v701_v53, %v659_v57  ;;  %v712_v1 = vmul.f32 %v702_v54, %v691_v58 }
 0x11a   : > { %1155 = vmatpush.msk.msra.mxu2 %vm622_vm0, %v711_v0  ;;  %1157 = vmatpush.msk.msra.mxu3 %vm622_vm0, %v712_v1 }
 0x11c   : > { %737 = vmatpush.msra.mxu2 %v709_v7  ;;  %757 = vmatpush.msra.mxu3 %v710_v8 }
 0x11e   : > { %738 = vmatpush.msra.mxu2 %v707_v13  ;;  %758 = vmatpush.msra.mxu3 %v708_v14 }
 0x120   : > { %739 = vmatpush.msra.mxu2 %v705_v17  ;;  %759 = vmatpush.msra.mxu3 %v706_v18 }
 0x122   : > { %740 = vmatpush.msra.mxu2 %v703_v19  ;;  %760 = vmatpush.msra.mxu3 %v704_v20 }
 0x123   : > { %1156 = vmatmul.msk.f32.vlgmr.msra.gmra.mxu2 %vm715_vm2, %v714_v21  ;;  %1158 = vmatmul.msk.f32.vlgmr.msra.gmra.mxu3 %vm715_vm2, %v714_v21 }
 0x1a6   : > { %v742_v26 = vpop.f32.mrf.mxu2  ;;  %v762_v27 = vpop.f32.mrf.mxu3 }
 0x1a7   : > { %v770_v28 = vmul.f32 %v768_v25, %v742_v26  ;;  %v771_v29 = vmul.f32 %v768_v25, %v762_v27 }
 0x1a9   : > { %v778_v31 = vadd.f32 %v776_v30, %v770_v28  ;;  %v779_v32 = vadd.f32 %v776_v30, %v771_v29 }
 0x1ab   : > { %1159 = vmatpush.msk.msrb.mxu2 %vm622_vm0, %v778_v31  ;;  %1161 = vmatpush.msk.msrb.mxu3 %vm622_vm0, %v779_v32 }
 0x1ac   : > { %1160 = vmatmul.msk.f32.vlgmr.msrb.gmra.mxu2 %vm782_vm3, %v781_v33  ;;  %1162 = vmatmul.msk.f32.vlgmr.msrb.gmra.mxu3 %vm782_vm3, %v781_v33 }
 0x1ad   : > { %1163 = vmatpush.msk.msra.mxu2 %vm622_vm0, %v834_v23  ;;  %1165 = vmatpush.msk.msra.mxu3 %vm622_vm0, %v835_v24 }
 0x1b4   : > { %1164 = vmatmul.msk.f32.vlgmr.msra.gmra.mxu2 %vm782_vm3, %v780_v34  ;;  %1166 = vmatmul.msk.f32.vlgmr.msra.gmra.mxu3 %vm782_vm3, %v780_v34 }
 0x22f   : > { %v809_v35 = vpop.f32.mrf.mxu2  ;;  %v829_v36 = vpop.f32.mrf.mxu3 }
 0x237   : > { %v860_v37 = vpop.f32.mrf.mxu2  ;;  %v880_v38 = vpop.f32.mrf.mxu3 }
 0x238   : > { %v861_v39 = vadd.f32 %v860_v37, %v809_v35  ;;  %v881_v40 = vadd.f32 %v880_v38, %v829_v36 }
 0x23a   : > { %v889_v42 = vadd.f32 %v887_v41, %v861_v39  ;;  %v890_v43 = vadd.f32 %v887_v41, %v881_v40 }
 0x23c   : > { %1167 = vmatpush.msk.msrb.mxu2 %vm622_vm0, %v889_v42  ;;  %1169 = vmatpush.msk.msrb.mxu3 %vm622_vm0, %v890_v43 }
 0x23d   : > { %1170 = vmatmul.msk.f32.vlgmr.msrb.gmra.mxu3 %vm782_vm3, %v892_v44  ;;  %1168 = vmatmul.msk.f32.vlgmr.msrb.gmra.mxu2 %vm782_vm3, %v892_v44 }
 0x23e   : > { %1173 = vmatpush.msk.msra.mxu3 %vm622_vm0, %v944_v45  ;;  %1171 = vmatpush.msk.msra.mxu2 %vm622_vm0, %v943_v46 }
 0x245   : > { %1174 = vmatmul.msk.f32.vlgmr.msra.gmra.mxu3 %vm782_vm3, %v891_v47  ;;  %1172 = vmatmul.msk.f32.vlgmr.msra.gmra.mxu2 %vm782_vm3, %v891_v47 }
 0x2c0   : > { %v939_v48 = vpop.f32.mrf.mxu3  ;;  %v919_v49 = vpop.f32.mrf.mxu2 }
 0x2c8   : > { %v989_v50 = vpop.f32.mrf.mxu3  ;;  %v969_v51 = vpop.f32.mrf.mxu2 }
 0x2c9   : > { %v990_v52 = vadd.f32 %v989_v50, %v939_v48  ;;  %v970_v53 = vadd.f32 %v969_v51, %v919_v49 }
 0x2cb   : > { %1251 = vtanh.f32 %v990_v52 }
 0x2cc   : > { %1253 = vtanh.f32 %v970_v53 }
 0x2d1   : > { %v1252_v54 = vpop.eup %1251 }
 0x2d2   : > { %v996_v55 = vrot.slane %v1252_v54, 4  ;;  %v1254_v56 = vpop.eup %1253 }
 0x2d4   : > { %v997_v57 = vsel %vm622_vm0, %v1254_v56, %v996_v55 }
 0x2d5   : > { %999 = vst [vmem:[%s539_s11] sm:$0xff] %v997_v57 }
 0x2d6   : > { %1372 = shalt.err (!%p1369_p5)
}
 0x2d7   : > { %1194 = dma.vmem_to_hbm [thread:$0]  (%p1537_p11), %s1015_s25, 128, %s1017_s15, %s1001_s29  }
 0x2d8 PF: > { %s1853_s9 = sld [smem:[#allocation12_spill]]  ;;  %p1207_p7 = pnand %p1132_p9, %p1541_p12 }
 0x2da   : > { %p1208_p8 = pneg %p1207_p7 }
 0x2de   : > { %s1028_s20 = sand.u32 1, %s1853_s9  }
 0x2df   : > { %s1029_s23 = scalar_lea.sflag [#allocation4], %s1028_s20 }
 0x2e0   : > { %1398 = dma.done.wait (%p1208_p8), %s1029_s23, 128  }
 0x2e1   : > { %1400 = vsyncadd (%p1208_p8), %s1029_s23, 4294967168  ;;  %s1856_s28 = sld [smem:[#allocation15_spill]]  ;;  %s1859_s25 = smov %s1407_s26 }
 0x2e2   : > { %s1857_s8 = sld [smem:[#allocation13_spill]] }
 0x2e3   : > { %s1858_s27 = sld [smem:[#allocation16_spill]] }
 0x2e7   : > { %p29_p10 = scmp.ge.s32.totalorder %s1856_s28, 4  }
 0x2e8   : > { %s1860_s26 = smov %s1857_s8 }
 0x2e9   :  { %31 = sbr.rel (!%p29_p10) target bundleno = 14 (0xe), region = 141 }
 0x2ee   :  { %1035 = vsyncpa [#allocation3], 1 }
 0x2ef   :  { %1037 = vsyncpa [#allocation3 + $0x1], 1 }
 0x2f0   :  { %1038 = vsyncpa [#allocation6], 1 }
 0x2f1   :  { %1040 = vsyncpa [#allocation6 + $0x1], 1 }
 0x2f2   :  { %1041 = vsyncpa [#allocation4], 1 }
 0x2f3   :  { %1043 = vsyncpa [#allocation4 + $0x1], 1 }

</bundles_post_ra>
